<compile_context>
chip_gen: v7x
topology: tpu7x:2x2x1
jax: 0.10.0
libtpu: 0.0.40
codegen_flags: <defaults>
</compile_context>

<pallas_src>
import math

import jax
import jax.numpy as jnp
from jax.experimental import pallas as pl
from jax.experimental.pallas import tpu as pltpu

# ---------------- model hyperparameters (small, synthetic) ----------------
B = 2          # batch
S = 8          # sequence length
D = 32         # d_model (== features)
H = 4          # number of heads
DK = D // H    # head dim
F = 64         # d_ff
BS = B * S     # flattened (batch * seq) rows
EPS = 1e-6
NEG_INF = -1e9


def _layernorm(v, alpha, bias):
    # Matches the custom PyTorch LayerNormalization: unbiased std (N-1),
    # eps added to std (not variance).
    mean = jnp.mean(v, axis=-1, keepdims=True)
    var = jnp.sum((v - mean) ** 2, axis=-1, keepdims=True) / (v.shape[-1] - 1)
    inv = 1.0 / (jnp.sqrt(var) + EPS)          # one narrow div, wide multiply
    return alpha * (v - mean) * inv + bias


def encoder_block_kernel(x_ref, mask_ref,
                         wqkv_ref, wo_ref,
                         w1_ref, b1_ref, w2_ref, b2_ref,
                         ln1_a_ref, ln1_b_ref, ln2_a_ref, ln2_b_ref,
                         o_ref):
    x = x_ref[...].astype(jnp.float32)                       # (BS, D)

    # Additive mask bias, computed ONCE (not per head).
    mask_bias = jnp.where(mask_ref[...] == 0,
                          jnp.float32(NEG_INF), jnp.float32(0.0))   # (B, S, S)

    # ---- residual connection 0: pre-norm + multi-head self-attention ------
    xn = _layernorm(x, ln1_a_ref[...], ln1_b_ref[...])        # (BS, D)

    # Fused QKV projection: one (BS, D) x (D, 3D) MXU push.
    qkv = jnp.dot(xn, wqkv_ref[...], preferred_element_type=jnp.float32)  # (BS, 3D)
    q = qkv[:, 0 * D:1 * D].reshape(B, S, D)
    k = qkv[:, 1 * D:2 * D].reshape(B, S, D)
    v = qkv[:, 2 * D:3 * D].reshape(B, S, D)

    inv_sqrt_dk = 1.0 / math.sqrt(DK)
    attn_out = jnp.zeros((BS, D), jnp.float32)
    for hh in range(H):                       # static unroll over heads,
        lo, hi = hh * DK, (hh + 1) * DK       # each einsum batched over B
        qh = q[:, :, lo:hi]                   # (B, S, DK)
        kh = k[:, :, lo:hi]
        vh = v[:, :, lo:hi]
        s = jnp.einsum('bqd,bkd->bqk', qh, kh,
                       preferred_element_type=jnp.float32) * inv_sqrt_dk
        s = s + mask_bias                                      # (B, S, S)
        s = s - jnp.max(s, axis=-1, keepdims=True)
        p = jnp.exp(s)
        p = p * (1.0 / jnp.sum(p, axis=-1, keepdims=True))     # softmax
        ctx = jnp.einsum('bqk,bkd->bqd', p, vh,
                         preferred_element_type=jnp.float32)   # (B, S, DK)
        # Fold the head-concatenate into W_o:
        #   concat_h(ctx_h) @ Wo == sum_h ctx_h @ Wo[h*DK:(h+1)*DK, :]
        attn_out = attn_out + jnp.dot(ctx.reshape(BS, DK), wo_ref[lo:hi, :],
                                      preferred_element_type=jnp.float32)

    x1 = x + attn_out                          # dropout = identity (eval)

    # ---- residual connection 1: pre-norm + feed forward --------------------
    xn2 = _layernorm(x1, ln2_a_ref[...], ln2_b_ref[...])
    hdn = jnp.maximum(
        jnp.dot(xn2, w1_ref[...], preferred_element_type=jnp.float32)
        + b1_ref[...], 0.0)                                    # (BS, F)
    ff = jnp.dot(hdn, w2_ref[...], preferred_element_type=jnp.float32) + b2_ref[...]
    o_ref[...] = (x1 + ff).astype(o_ref.dtype)


def _full_spec(shape):
    """Whole-array block replicated across the (single-step) grid."""
    idx = (0,) * len(shape)
    return pl.BlockSpec(shape, lambda i, _idx=idx: _idx)


def encoder_block(x, mask, params):
    """x: (B, S, D) f32, mask: (B, S, S) f32/int -> (B, S, D) f32."""
    (wq, wk, wv, wo, w1, b1, w2, b2, ln1a, ln1b, ln2a, ln2b) = params

    wqkv = jnp.concatenate([wq, wk, wv], axis=1)     # (D, 3D) fused QKV weight
    x2d = x.reshape(BS, D)                           # wrapper-side layout plumbing

    out2d = pl.pallas_call(
        encoder_block_kernel,
        out_shape=jax.ShapeDtypeStruct((BS, D), jnp.float32),
        grid_spec=pltpu.PrefetchScalarGridSpec(
            num_scalar_prefetch=0,
            grid=(1,),                     # whole problem in one grid step
            in_specs=[
                _full_spec((BS, D)),       # x (flattened)
                _full_spec((B, S, S)),     # mask
                _full_spec((D, 3 * D)),    # fused wqkv
                _full_spec((D, D)),        # wo
                _full_spec((D, F)),        # w1
                _full_spec((1, F)),        # b1
                _full_spec((F, D)),        # w2
                _full_spec((1, D)),        # b2
                _full_spec((1, D)),        # ln1 alpha
                _full_spec((1, D)),        # ln1 bias
                _full_spec((1, D)),        # ln2 alpha
                _full_spec((1, D)),        # ln2 bias
            ],
            out_specs=_full_spec((BS, D)),
        ),
        compiler_params=pltpu.CompilerParams(
            dimension_semantics=("arbitrary",)),
    )(x2d, mask, wqkv, wo, w1, b1, w2, b2, ln1a, ln1b, ln2a, ln2b)
    return out2d.reshape(B, S, D)


# ---------------- pure-JAX reference (for correctness check) ----------------
def encoder_block_ref(x, mask, params):
    (wq, wk, wv, wo, w1, b1, w2, b2, ln1a, ln1b, ln2a, ln2b) = params

    def ln(v, a, b):
        mean = jnp.mean(v, axis=-1, keepdims=True)
        var = jnp.sum((v - mean) ** 2, axis=-1, keepdims=True) / (v.shape[-1] - 1)
        return a * (v - mean) / (jnp.sqrt(var) + EPS) + b

    xn = ln(x, ln1a[0], ln1b[0])
    q = xn @ wq
    k = xn @ wk
    v = xn @ wv
    qh = q.reshape(B, S, H, DK).transpose(0, 2, 1, 3)
    kh = k.reshape(B, S, H, DK).transpose(0, 2, 1, 3)
    vh = v.reshape(B, S, H, DK).transpose(0, 2, 1, 3)
    scores = jnp.einsum("bhqd,bhkd->bhqk", qh, kh) / math.sqrt(DK)
    scores = jnp.where(mask[:, None, :, :] == 0, NEG_INF, scores)
    p = jax.nn.softmax(scores, axis=-1)
    attn = jnp.einsum("bhqk,bhkd->bhqd", p, vh)
    attn = attn.transpose(0, 2, 1, 3).reshape(B, S, D) @ wo
    x1 = x + attn
    xn2 = ln(x1, ln2a[0], ln2b[0])
    ff = jnp.maximum(xn2 @ w1 + b1[0], 0.0) @ w2 + b2[0]
    return x1 + ff


if __name__ == "__main__":
    key = jax.random.PRNGKey(0)
    keys = jax.random.split(key, 16)

    # Deterministic synthetic parameters. PyTorch nn.Linear stores (out, in)
    # and computes x @ W.T; we store the already-transposed (in, out) layout.
    def lin_w(k, din, dout):
        bound = 1.0 / math.sqrt(din)
        return jax.random.uniform(k, (din, dout), jnp.float32, -bound, bound)

    wq = lin_w(keys[0], D, D)
    wk = lin_w(keys[1], D, D)
    wv = lin_w(keys[2], D, D)
    wo = lin_w(keys[3], D, D)
    w1 = lin_w(keys[4], D, F)
    b1 = jax.random.uniform(keys[5], (1, F), jnp.float32,
                            -1.0 / math.sqrt(D), 1.0 / math.sqrt(D))
    w2 = lin_w(keys[6], F, D)
    b2 = jax.random.uniform(keys[7], (1, D), jnp.float32,
                            -1.0 / math.sqrt(F), 1.0 / math.sqrt(F))
    ln1a = jnp.ones((1, D), jnp.float32)
    ln1b = jnp.zeros((1, D), jnp.float32)
    ln2a = jnp.ones((1, D), jnp.float32)
    ln2b = jnp.zeros((1, D), jnp.float32)
    params = (wq, wk, wv, wo, w1, b1, w2, b2, ln1a, ln1b, ln2a, ln2b)

    x = jax.random.normal(keys[8], (B, S, D), jnp.float32)
    # Padding-style mask: batch 0 sees everything, batch 1 has last 2 keys masked.
    mask = jnp.ones((B, S, S), jnp.float32)
    mask = mask.at[1, :, S - 2:].set(0.0)

    out = encoder_block(x, mask, params)
    out = jax.block_until_ready(out)

    ref = encoder_block_ref(x, mask, params)
    assert out.shape == (B, S, D)
    assert jnp.allclose(out, ref, atol=1e-4, rtol=1e-4), (
        "max abs diff = %g" % float(jnp.max(jnp.abs(out - ref))))

    print("KERNEL_OK")
</pallas_src>

<mosaic_0001>
module attributes {stable_mosaic.version = 11 : i64} {
  func.func @encoder_block_kernel(%arg0: i32, %arg1: memref<16x32xf32, #tpu.memory_space<vmem>>, %arg2: memref<2x8x8xf32, #tpu.memory_space<vmem>>, %arg3: memref<32x96xf32, #tpu.memory_space<vmem>>, %arg4: memref<32x32xf32, #tpu.memory_space<vmem>>, %arg5: memref<32x64xf32, #tpu.memory_space<vmem>>, %arg6: memref<1x64xf32, #tpu.memory_space<vmem>>, %arg7: memref<64x32xf32, #tpu.memory_space<vmem>>, %arg8: memref<1x32xf32, #tpu.memory_space<vmem>>, %arg9: memref<1x32xf32, #tpu.memory_space<vmem>>, %arg10: memref<1x32xf32, #tpu.memory_space<vmem>>, %arg11: memref<1x32xf32, #tpu.memory_space<vmem>>, %arg12: memref<1x32xf32, #tpu.memory_space<vmem>>, %arg13: memref<16x32xf32, #tpu.memory_space<vmem>>) attributes {dimension_semantics = [#tpu.dimension_semantics<arbitrary>], iteration_bounds = array<i64: 1>, scalar_prefetch = 0 : i64, scratch_operands = 0 : i64, tpu.core_type = #tpu.core_type<tc>, window_params = [{pipeline_mode = #tpu.pipeline_mode<synchronous>, transform_indices = @transform_0, window_bounds = array<i64: 16, 32>}, {pipeline_mode = #tpu.pipeline_mode<synchronous>, transform_indices = @transform_1, window_bounds = array<i64: 2, 8, 8>}, {pipeline_mode = #tpu.pipeline_mode<synchronous>, transform_indices = @transform_2, window_bounds = array<i64: 32, 96>}, {pipeline_mode = #tpu.pipeline_mode<synchronous>, transform_indices = @transform_3, window_bounds = array<i64: 32, 32>}, {pipeline_mode = #tpu.pipeline_mode<synchronous>, transform_indices = @transform_4, window_bounds = array<i64: 32, 64>}, {pipeline_mode = #tpu.pipeline_mode<synchronous>, transform_indices = @transform_5, window_bounds = array<i64: 1, 64>}, {pipeline_mode = #tpu.pipeline_mode<synchronous>, transform_indices = @transform_6, window_bounds = array<i64: 64, 32>}, {pipeline_mode = #tpu.pipeline_mode<synchronous>, transform_indices = @transform_7, window_bounds = array<i64: 1, 32>}, {pipeline_mode = #tpu.pipeline_mode<synchronous>, transform_indices = @transform_8, window_bounds = array<i64: 1, 32>}, {pipeline_mode = #tpu.pipeline_mode<synchronous>, transform_indices = @transform_9, window_bounds = array<i64: 1, 32>}, {pipeline_mode = #tpu.pipeline_mode<synchronous>, transform_indices = @transform_10, window_bounds = array<i64: 1, 32>}, {pipeline_mode = #tpu.pipeline_mode<synchronous>, transform_indices = @transform_11, window_bounds = array<i64: 1, 32>}, {pipeline_mode = #tpu.pipeline_mode<synchronous>, transform_indices = @transform_12, window_bounds = array<i64: 16, 32>}]} {
    %c0 = arith.constant 0 : index
    %c0_0 = arith.constant 0 : index
    %0 = vector.load %arg1[%c0, %c0_0] : memref<16x32xf32, #tpu.memory_space<vmem>>, vector<16x32xf32>
    %c0_1 = arith.constant 0 : index
    %c0_2 = arith.constant 0 : index
    %c0_3 = arith.constant 0 : index
    %1 = vector.load %arg2[%c0_1, %c0_2, %c0_3] : memref<2x8x8xf32, #tpu.memory_space<vmem>>, vector<2x8x8xf32>
    %cst = arith.constant 0.000000e+00 : f32
    %2 = vector.broadcast %cst : f32 to vector<2x8x8xf32>
    %3 = arith.cmpf oeq, %1, %2 : vector<2x8x8xf32>
    %cst_4 = arith.constant -1.000000e+09 : f32
    %cst_5 = arith.constant 0.000000e+00 : f32
    %4 = vector.broadcast %cst_4 : f32 to vector<2x8x8xf32>
    %5 = vector.broadcast %cst_5 : f32 to vector<2x8x8xf32>
    %6 = arith.select %3, %4, %5 : vector<2x8x8xi1>, vector<2x8x8xf32>
    %c0_6 = arith.constant 0 : index
    %c0_7 = arith.constant 0 : index
    %7 = vector.load %arg9[%c0_6, %c0_7] : memref<1x32xf32, #tpu.memory_space<vmem>>, vector<1x32xf32>
    %c0_8 = arith.constant 0 : index
    %c0_9 = arith.constant 0 : index
    %8 = vector.load %arg10[%c0_8, %c0_9] : memref<1x32xf32, #tpu.memory_space<vmem>>, vector<1x32xf32>
    %cst_10 = arith.constant dense<0.000000e+00> : vector<16xf32>
    %9 = vector.multi_reduction <add>, %0, %cst_10 [1] : vector<16x32xf32> to vector<16xf32>
    %10 = vector.shape_cast %9 : vector<16xf32> to vector<16x1xf32>
    %cst_11 = arith.constant 3.200000e+01 : f32
    %11 = vector.broadcast %cst_11 : f32 to vector<16x1xf32>
    %12 = arith.divf %10, %11 : vector<16x1xf32>
    %13 = vector.broadcast %12 : vector<16x1xf32> to vector<16x32xf32>
    %14 = arith.subf %0, %13 : vector<16x32xf32>
    %15 = arith.mulf %14, %14 : vector<16x32xf32>
    %cst_12 = arith.constant dense<0.000000e+00> : vector<16xf32>
    %16 = vector.multi_reduction <add>, %15, %cst_12 [1] : vector<16x32xf32> to vector<16xf32>
    %17 = vector.shape_cast %16 : vector<16xf32> to vector<16x1xf32>
    %cst_13 = arith.constant 3.100000e+01 : f32
    %18 = vector.broadcast %cst_13 : f32 to vector<16x1xf32>
    %19 = arith.divf %17, %18 : vector<16x1xf32>
    %20 = math.sqrt %19 : vector<16x1xf32>
    %cst_14 = arith.constant 9.99999997E-7 : f32
    %21 = vector.broadcast %cst_14 : f32 to vector<16x1xf32>
    %22 = arith.addf %20, %21 : vector<16x1xf32>
    %cst_15 = arith.constant 1.000000e+00 : f32
    %23 = vector.broadcast %cst_15 : f32 to vector<16x1xf32>
    %24 = arith.divf %23, %22 : vector<16x1xf32>
    %25 = vector.broadcast %12 : vector<16x1xf32> to vector<16x32xf32>
    %26 = arith.subf %0, %25 : vector<16x32xf32>
    %27 = vector.broadcast %7 : vector<1x32xf32> to vector<16x32xf32>
    %28 = arith.mulf %27, %26 : vector<16x32xf32>
    %29 = vector.broadcast %24 : vector<16x1xf32> to vector<16x32xf32>
    %30 = arith.mulf %28, %29 : vector<16x32xf32>
    %31 = vector.broadcast %8 : vector<1x32xf32> to vector<16x32xf32>
    %32 = arith.addf %30, %31 : vector<16x32xf32>
    %c0_16 = arith.constant 0 : index
    %c0_17 = arith.constant 0 : index
    %33 = vector.load %arg3[%c0_16, %c0_17] : memref<32x96xf32, #tpu.memory_space<vmem>>, vector<32x96xf32>
    %cst_18 = arith.constant dense<0.000000e+00> : vector<16x96xf32>
    %34 = tpu.matmul %32, %33, %cst_18 {dimension_numbers = #tpu.dot_dimension_numbers<[1], [0], [0], [1], [0, 0, 1, 1], [], []>} : vector<16x32xf32>, vector<32x96xf32>, vector<16x96xf32> -> vector<16x96xf32>
    %35 = vector.extract_strided_slice %34 {offsets = [0, 0], sizes = [16, 32], strides = [1, 1]} : vector<16x96xf32> to vector<16x32xf32>
    %36 = vector.shape_cast %35 : vector<16x32xf32> to vector<2x8x32xf32>
    %37 = vector.extract_strided_slice %34 {offsets = [0, 32], sizes = [16, 32], strides = [1, 1]} : vector<16x96xf32> to vector<16x32xf32>
    %38 = vector.shape_cast %37 : vector<16x32xf32> to vector<2x8x32xf32>
    %39 = vector.extract_strided_slice %34 {offsets = [0, 64], sizes = [16, 32], strides = [1, 1]} : vector<16x96xf32> to vector<16x32xf32>
    %40 = vector.shape_cast %39 : vector<16x32xf32> to vector<2x8x32xf32>
    %cst_19 = arith.constant 0.000000e+00 : f32
    %41 = vector.broadcast %cst_19 : f32 to vector<16x32xf32>
    %42 = vector.extract_strided_slice %36 {offsets = [0, 0, 0], sizes = [2, 8, 8], strides = [1, 1, 1]} : vector<2x8x32xf32> to vector<2x8x8xf32>
    %43 = vector.extract_strided_slice %38 {offsets = [0, 0, 0], sizes = [2, 8, 8], strides = [1, 1, 1]} : vector<2x8x32xf32> to vector<2x8x8xf32>
    %44 = vector.extract_strided_slice %40 {offsets = [0, 0, 0], sizes = [2, 8, 8], strides = [1, 1, 1]} : vector<2x8x32xf32> to vector<2x8x8xf32>
    "tpu.trace_start"() <{level = 10 : i32, message = "bqd,bkd->bqk"}> : () -> ()
    %cst_20 = arith.constant dense<0.000000e+00> : vector<2x8x8xf32>
    %45 = tpu.matmul %42, %43, %cst_20 {dimension_numbers = #tpu.dot_dimension_numbers<[2], [2], [1], [1], [0, 0, 0, 1, 1, 1], [0], [0]>} : vector<2x8x8xf32>, vector<2x8x8xf32>, vector<2x8x8xf32> -> vector<2x8x8xf32>
    "tpu.trace_stop"() : () -> ()
    %cst_21 = arith.constant 0.353553385 : f32
    %46 = vector.broadcast %cst_21 : f32 to vector<2x8x8xf32>
    %47 = arith.mulf %45, %46 : vector<2x8x8xf32>
    %48 = arith.addf %47, %6 : vector<2x8x8xf32>
    %cst_22 = arith.constant dense<0xFF800000> : vector<2x8xf32>
    %49 = vector.multi_reduction <maximumf>, %48, %cst_22 [2] : vector<2x8x8xf32> to vector<2x8xf32>
    %50 = vector.shape_cast %49 : vector<2x8xf32> to vector<2x8x1xf32>
    %51 = vector.broadcast %50 : vector<2x8x1xf32> to vector<2x8x8xf32>
    %52 = arith.subf %48, %51 : vector<2x8x8xf32>
    %53 = math.exp %52 : vector<2x8x8xf32>
    %cst_23 = arith.constant dense<0.000000e+00> : vector<2x8xf32>
    %54 = vector.multi_reduction <add>, %53, %cst_23 [2] : vector<2x8x8xf32> to vector<2x8xf32>
    %55 = vector.shape_cast %54 : vector<2x8xf32> to vector<2x8x1xf32>
    %cst_24 = arith.constant 1.000000e+00 : f32
    %56 = vector.broadcast %cst_24 : f32 to vector<2x8x1xf32>
    %57 = arith.divf %56, %55 : vector<2x8x1xf32>
    %58 = vector.broadcast %57 : vector<2x8x1xf32> to vector<2x8x8xf32>
    %59 = arith.mulf %53, %58 : vector<2x8x8xf32>
    "tpu.trace_start"() <{level = 10 : i32, message = "bqk,bkd->bqd"}> : () -> ()
    %cst_25 = arith.constant dense<0.000000e+00> : vector<2x8x8xf32>
    %60 = tpu.matmul %59, %44, %cst_25 {dimension_numbers = #tpu.dot_dimension_numbers<[2], [1], [1], [2], [0, 0, 0, 1, 1, 2], [0], [0]>} : vector<2x8x8xf32>, vector<2x8x8xf32>, vector<2x8x8xf32> -> vector<2x8x8xf32>
    "tpu.trace_stop"() : () -> ()
    %61 = vector.shape_cast %60 : vector<2x8x8xf32> to vector<16x8xf32>
    %c0_26 = arith.constant 0 : index
    %c0_27 = arith.constant 0 : index
    %62 = vector.load %arg4[%c0_26, %c0_27] : memref<32x32xf32, #tpu.memory_space<vmem>>, vector<8x32xf32>
    %cst_28 = arith.constant dense<0.000000e+00> : vector<16x32xf32>
    %63 = tpu.matmul %61, %62, %cst_28 {dimension_numbers = #tpu.dot_dimension_numbers<[1], [0], [0], [1], [0, 0, 1, 1], [], []>} : vector<16x8xf32>, vector<8x32xf32>, vector<16x32xf32> -> vector<16x32xf32>
    %64 = arith.addf %41, %63 : vector<16x32xf32>
    %65 = vector.extract_strided_slice %36 {offsets = [0, 0, 8], sizes = [2, 8, 8], strides = [1, 1, 1]} : vector<2x8x32xf32> to vector<2x8x8xf32>
    %66 = vector.extract_strided_slice %38 {offsets = [0, 0, 8], sizes = [2, 8, 8], strides = [1, 1, 1]} : vector<2x8x32xf32> to vector<2x8x8xf32>
    %67 = vector.extract_strided_slice %40 {offsets = [0, 0, 8], sizes = [2, 8, 8], strides = [1, 1, 1]} : vector<2x8x32xf32> to vector<2x8x8xf32>
    "tpu.trace_start"() <{level = 10 : i32, message = "bqd,bkd->bqk"}> : () -> ()
    %cst_29 = arith.constant dense<0.000000e+00> : vector<2x8x8xf32>
    %68 = tpu.matmul %65, %66, %cst_29 {dimension_numbers = #tpu.dot_dimension_numbers<[2], [2], [1], [1], [0, 0, 0, 1, 1, 1], [0], [0]>} : vector<2x8x8xf32>, vector<2x8x8xf32>, vector<2x8x8xf32> -> vector<2x8x8xf32>
    "tpu.trace_stop"() : () -> ()
    %cst_30 = arith.constant 0.353553385 : f32
    %69 = vector.broadcast %cst_30 : f32 to vector<2x8x8xf32>
    %70 = arith.mulf %68, %69 : vector<2x8x8xf32>
    %71 = arith.addf %70, %6 : vector<2x8x8xf32>
    %cst_31 = arith.constant dense<0xFF800000> : vector<2x8xf32>
    %72 = vector.multi_reduction <maximumf>, %71, %cst_31 [2] : vector<2x8x8xf32> to vector<2x8xf32>
    %73 = vector.shape_cast %72 : vector<2x8xf32> to vector<2x8x1xf32>
    %74 = vector.broadcast %73 : vector<2x8x1xf32> to vector<2x8x8xf32>
    %75 = arith.subf %71, %74 : vector<2x8x8xf32>
    %76 = math.exp %75 : vector<2x8x8xf32>
    %cst_32 = arith.constant dense<0.000000e+00> : vector<2x8xf32>
    %77 = vector.multi_reduction <add>, %76, %cst_32 [2] : vector<2x8x8xf32> to vector<2x8xf32>
    %78 = vector.shape_cast %77 : vector<2x8xf32> to vector<2x8x1xf32>
    %cst_33 = arith.constant 1.000000e+00 : f32
    %79 = vector.broadcast %cst_33 : f32 to vector<2x8x1xf32>
    %80 = arith.divf %79, %78 : vector<2x8x1xf32>
    %81 = vector.broadcast %80 : vector<2x8x1xf32> to vector<2x8x8xf32>
    %82 = arith.mulf %76, %81 : vector<2x8x8xf32>
    "tpu.trace_start"() <{level = 10 : i32, message = "bqk,bkd->bqd"}> : () -> ()
    %cst_34 = arith.constant dense<0.000000e+00> : vector<2x8x8xf32>
    %83 = tpu.matmul %82, %67, %cst_34 {dimension_numbers = #tpu.dot_dimension_numbers<[2], [1], [1], [2], [0, 0, 0, 1, 1, 2], [0], [0]>} : vector<2x8x8xf32>, vector<2x8x8xf32>, vector<2x8x8xf32> -> vector<2x8x8xf32>
    "tpu.trace_stop"() : () -> ()
    %84 = vector.shape_cast %83 : vector<2x8x8xf32> to vector<16x8xf32>
    %c8 = arith.constant 8 : index
    %c0_35 = arith.constant 0 : index
    %85 = vector.load %arg4[%c8, %c0_35] : memref<32x32xf32, #tpu.memory_space<vmem>>, vector<8x32xf32>
    %cst_36 = arith.constant dense<0.000000e+00> : vector<16x32xf32>
    %86 = tpu.matmul %84, %85, %cst_36 {dimension_numbers = #tpu.dot_dimension_numbers<[1], [0], [0], [1], [0, 0, 1, 1], [], []>} : vector<16x8xf32>, vector<8x32xf32>, vector<16x32xf32> -> vector<16x32xf32>
    %87 = arith.addf %64, %86 : vector<16x32xf32>
    %88 = vector.extract_strided_slice %36 {offsets = [0, 0, 16], sizes = [2, 8, 8], strides = [1, 1, 1]} : vector<2x8x32xf32> to vector<2x8x8xf32>
    %89 = vector.extract_strided_slice %38 {offsets = [0, 0, 16], sizes = [2, 8, 8], strides = [1, 1, 1]} : vector<2x8x32xf32> to vector<2x8x8xf32>
    %90 = vector.extract_strided_slice %40 {offsets = [0, 0, 16], sizes = [2, 8, 8], strides = [1, 1, 1]} : vector<2x8x32xf32> to vector<2x8x8xf32>
    "tpu.trace_start"() <{level = 10 : i32, message = "bqd,bkd->bqk"}> : () -> ()
    %cst_37 = arith.constant dense<0.000000e+00> : vector<2x8x8xf32>
    %91 = tpu.matmul %88, %89, %cst_37 {dimension_numbers = #tpu.dot_dimension_numbers<[2], [2], [1], [1], [0, 0, 0, 1, 1, 1], [0], [0]>} : vector<2x8x8xf32>, vector<2x8x8xf32>, vector<2x8x8xf32> -> vector<2x8x8xf32>
    "tpu.trace_stop"() : () -> ()
    %cst_38 = arith.constant 0.353553385 : f32
    %92 = vector.broadcast %cst_38 : f32 to vector<2x8x8xf32>
    %93 = arith.mulf %91, %92 : vector<2x8x8xf32>
    %94 = arith.addf %93, %6 : vector<2x8x8xf32>
    %cst_39 = arith.constant dense<0xFF800000> : vector<2x8xf32>
    %95 = vector.multi_reduction <maximumf>, %94, %cst_39 [2] : vector<2x8x8xf32> to vector<2x8xf32>
    %96 = vector.shape_cast %95 : vector<2x8xf32> to vector<2x8x1xf32>
    %97 = vector.broadcast %96 : vector<2x8x1xf32> to vector<2x8x8xf32>
    %98 = arith.subf %94, %97 : vector<2x8x8xf32>
    %99 = math.exp %98 : vector<2x8x8xf32>
    %cst_40 = arith.constant dense<0.000000e+00> : vector<2x8xf32>
    %100 = vector.multi_reduction <add>, %99, %cst_40 [2] : vector<2x8x8xf32> to vector<2x8xf32>
    %101 = vector.shape_cast %100 : vector<2x8xf32> to vector<2x8x1xf32>
    %cst_41 = arith.constant 1.000000e+00 : f32
    %102 = vector.broadcast %cst_41 : f32 to vector<2x8x1xf32>
    %103 = arith.divf %102, %101 : vector<2x8x1xf32>
    %104 = vector.broadcast %103 : vector<2x8x1xf32> to vector<2x8x8xf32>
    %105 = arith.mulf %99, %104 : vector<2x8x8xf32>
    "tpu.trace_start"() <{level = 10 : i32, message = "bqk,bkd->bqd"}> : () -> ()
    %cst_42 = arith.constant dense<0.000000e+00> : vector<2x8x8xf32>
    %106 = tpu.matmul %105, %90, %cst_42 {dimension_numbers = #tpu.dot_dimension_numbers<[2], [1], [1], [2], [0, 0, 0, 1, 1, 2], [0], [0]>} : vector<2x8x8xf32>, vector<2x8x8xf32>, vector<2x8x8xf32> -> vector<2x8x8xf32>
    "tpu.trace_stop"() : () -> ()
    %107 = vector.shape_cast %106 : vector<2x8x8xf32> to vector<16x8xf32>
    %c16 = arith.constant 16 : index
    %c0_43 = arith.constant 0 : index
    %108 = vector.load %arg4[%c16, %c0_43] : memref<32x32xf32, #tpu.memory_space<vmem>>, vector<8x32xf32>
    %cst_44 = arith.constant dense<0.000000e+00> : vector<16x32xf32>
    %109 = tpu.matmul %107, %108, %cst_44 {dimension_numbers = #tpu.dot_dimension_numbers<[1], [0], [0], [1], [0, 0, 1, 1], [], []>} : vector<16x8xf32>, vector<8x32xf32>, vector<16x32xf32> -> vector<16x32xf32>
    %110 = arith.addf %87, %109 : vector<16x32xf32>
    %111 = vector.extract_strided_slice %36 {offsets = [0, 0, 24], sizes = [2, 8, 8], strides = [1, 1, 1]} : vector<2x8x32xf32> to vector<2x8x8xf32>
    %112 = vector.extract_strided_slice %38 {offsets = [0, 0, 24], sizes = [2, 8, 8], strides = [1, 1, 1]} : vector<2x8x32xf32> to vector<2x8x8xf32>
    %113 = vector.extract_strided_slice %40 {offsets = [0, 0, 24], sizes = [2, 8, 8], strides = [1, 1, 1]} : vector<2x8x32xf32> to vector<2x8x8xf32>
    "tpu.trace_start"() <{level = 10 : i32, message = "bqd,bkd->bqk"}> : () -> ()
    %cst_45 = arith.constant dense<0.000000e+00> : vector<2x8x8xf32>
    %114 = tpu.matmul %111, %112, %cst_45 {dimension_numbers = #tpu.dot_dimension_numbers<[2], [2], [1], [1], [0, 0, 0, 1, 1, 1], [0], [0]>} : vector<2x8x8xf32>, vector<2x8x8xf32>, vector<2x8x8xf32> -> vector<2x8x8xf32>
    "tpu.trace_stop"() : () -> ()
    %cst_46 = arith.constant 0.353553385 : f32
    %115 = vector.broadcast %cst_46 : f32 to vector<2x8x8xf32>
    %116 = arith.mulf %114, %115 : vector<2x8x8xf32>
    %117 = arith.addf %116, %6 : vector<2x8x8xf32>
    %cst_47 = arith.constant dense<0xFF800000> : vector<2x8xf32>
    %118 = vector.multi_reduction <maximumf>, %117, %cst_47 [2] : vector<2x8x8xf32> to vector<2x8xf32>
    %119 = vector.shape_cast %118 : vector<2x8xf32> to vector<2x8x1xf32>
    %120 = vector.broadcast %119 : vector<2x8x1xf32> to vector<2x8x8xf32>
    %121 = arith.subf %117, %120 : vector<2x8x8xf32>
    %122 = math.exp %121 : vector<2x8x8xf32>
    %cst_48 = arith.constant dense<0.000000e+00> : vector<2x8xf32>
    %123 = vector.multi_reduction <add>, %122, %cst_48 [2] : vector<2x8x8xf32> to vector<2x8xf32>
    %124 = vector.shape_cast %123 : vector<2x8xf32> to vector<2x8x1xf32>
    %cst_49 = arith.constant 1.000000e+00 : f32
    %125 = vector.broadcast %cst_49 : f32 to vector<2x8x1xf32>
    %126 = arith.divf %125, %124 : vector<2x8x1xf32>
    %127 = vector.broadcast %126 : vector<2x8x1xf32> to vector<2x8x8xf32>
    %128 = arith.mulf %122, %127 : vector<2x8x8xf32>
    "tpu.trace_start"() <{level = 10 : i32, message = "bqk,bkd->bqd"}> : () -> ()
    %cst_50 = arith.constant dense<0.000000e+00> : vector<2x8x8xf32>
    %129 = tpu.matmul %128, %113, %cst_50 {dimension_numbers = #tpu.dot_dimension_numbers<[2], [1], [1], [2], [0, 0, 0, 1, 1, 2], [0], [0]>} : vector<2x8x8xf32>, vector<2x8x8xf32>, vector<2x8x8xf32> -> vector<2x8x8xf32>
    "tpu.trace_stop"() : () -> ()
    %130 = vector.shape_cast %129 : vector<2x8x8xf32> to vector<16x8xf32>
    %c24 = arith.constant 24 : index
    %c0_51 = arith.constant 0 : index
    %131 = vector.load %arg4[%c24, %c0_51] : memref<32x32xf32, #tpu.memory_space<vmem>>, vector<8x32xf32>
    %cst_52 = arith.constant dense<0.000000e+00> : vector<16x32xf32>
    %132 = tpu.matmul %130, %131, %cst_52 {dimension_numbers = #tpu.dot_dimension_numbers<[1], [0], [0], [1], [0, 0, 1, 1], [], []>} : vector<16x8xf32>, vector<8x32xf32>, vector<16x32xf32> -> vector<16x32xf32>
    %133 = arith.addf %110, %132 : vector<16x32xf32>
    %134 = arith.addf %0, %133 : vector<16x32xf32>
    %c0_53 = arith.constant 0 : index
    %c0_54 = arith.constant 0 : index
    %135 = vector.load %arg11[%c0_53, %c0_54] : memref<1x32xf32, #tpu.memory_space<vmem>>, vector<1x32xf32>
    %c0_55 = arith.constant 0 : index
    %c0_56 = arith.constant 0 : index
    %136 = vector.load %arg12[%c0_55, %c0_56] : memref<1x32xf32, #tpu.memory_space<vmem>>, vector<1x32xf32>
    %cst_57 = arith.constant dense<0.000000e+00> : vector<16xf32>
    %137 = vector.multi_reduction <add>, %134, %cst_57 [1] : vector<16x32xf32> to vector<16xf32>
    %138 = vector.shape_cast %137 : vector<16xf32> to vector<16x1xf32>
    %cst_58 = arith.constant 3.200000e+01 : f32
    %139 = vector.broadcast %cst_58 : f32 to vector<16x1xf32>
    %140 = arith.divf %138, %139 : vector<16x1xf32>
    %141 = vector.broadcast %140 : vector<16x1xf32> to vector<16x32xf32>
    %142 = arith.subf %134, %141 : vector<16x32xf32>
    %143 = arith.mulf %142, %142 : vector<16x32xf32>
    %cst_59 = arith.constant dense<0.000000e+00> : vector<16xf32>
    %144 = vector.multi_reduction <add>, %143, %cst_59 [1] : vector<16x32xf32> to vector<16xf32>
    %145 = vector.shape_cast %144 : vector<16xf32> to vector<16x1xf32>
    %cst_60 = arith.constant 3.100000e+01 : f32
    %146 = vector.broadcast %cst_60 : f32 to vector<16x1xf32>
    %147 = arith.divf %145, %146 : vector<16x1xf32>
    %148 = math.sqrt %147 : vector<16x1xf32>
    %cst_61 = arith.constant 9.99999997E-7 : f32
    %149 = vector.broadcast %cst_61 : f32 to vector<16x1xf32>
    %150 = arith.addf %148, %149 : vector<16x1xf32>
    %cst_62 = arith.constant 1.000000e+00 : f32
    %151 = vector.broadcast %cst_62 : f32 to vector<16x1xf32>
    %152 = arith.divf %151, %150 : vector<16x1xf32>
    %153 = vector.broadcast %140 : vector<16x1xf32> to vector<16x32xf32>
    %154 = arith.subf %134, %153 : vector<16x32xf32>
    %155 = vector.broadcast %135 : vector<1x32xf32> to vector<16x32xf32>
    %156 = arith.mulf %155, %154 : vector<16x32xf32>
    %157 = vector.broadcast %152 : vector<16x1xf32> to vector<16x32xf32>
    %158 = arith.mulf %156, %157 : vector<16x32xf32>
    %159 = vector.broadcast %136 : vector<1x32xf32> to vector<16x32xf32>
    %160 = arith.addf %158, %159 : vector<16x32xf32>
    %c0_63 = arith.constant 0 : index
    %c0_64 = arith.constant 0 : index
    %161 = vector.load %arg5[%c0_63, %c0_64] : memref<32x64xf32, #tpu.memory_space<vmem>>, vector<32x64xf32>
    %cst_65 = arith.constant dense<0.000000e+00> : vector<16x64xf32>
    %162 = tpu.matmul %160, %161, %cst_65 {dimension_numbers = #tpu.dot_dimension_numbers<[1], [0], [0], [1], [0, 0, 1, 1], [], []>} : vector<16x32xf32>, vector<32x64xf32>, vector<16x64xf32> -> vector<16x64xf32>
    %c0_66 = arith.constant 0 : index
    %c0_67 = arith.constant 0 : index
    %163 = vector.load %arg6[%c0_66, %c0_67] : memref<1x64xf32, #tpu.memory_space<vmem>>, vector<1x64xf32>
    %164 = vector.broadcast %163 : vector<1x64xf32> to vector<16x64xf32>
    %165 = arith.addf %162, %164 : vector<16x64xf32>
    %cst_68 = arith.constant 0.000000e+00 : f32
    %166 = vector.broadcast %cst_68 : f32 to vector<16x64xf32>
    %167 = arith.maximumf %165, %166 : vector<16x64xf32>
    %c0_69 = arith.constant 0 : index
    %c0_70 = arith.constant 0 : index
    %168 = vector.load %arg7[%c0_69, %c0_70] : memref<64x32xf32, #tpu.memory_space<vmem>>, vector<64x32xf32>
    %cst_71 = arith.constant dense<0.000000e+00> : vector<16x32xf32>
    %169 = tpu.matmul %167, %168, %cst_71 {dimension_numbers = #tpu.dot_dimension_numbers<[1], [0], [0], [1], [0, 0, 1, 1], [], []>} : vector<16x64xf32>, vector<64x32xf32>, vector<16x32xf32> -> vector<16x32xf32>
    %c0_72 = arith.constant 0 : index
    %c0_73 = arith.constant 0 : index
    %170 = vector.load %arg8[%c0_72, %c0_73] : memref<1x32xf32, #tpu.memory_space<vmem>>, vector<1x32xf32>
    %171 = vector.broadcast %170 : vector<1x32xf32> to vector<16x32xf32>
    %172 = arith.addf %169, %171 : vector<16x32xf32>
    %173 = arith.addf %134, %172 : vector<16x32xf32>
    %c0_74 = arith.constant 0 : index
    %c0_75 = arith.constant 0 : index
    %174 = vector.load %arg13[%c0_74, %c0_75] : memref<16x32xf32, #tpu.memory_space<vmem>>, vector<16x32xf32>
    tpu.vector_store %arg13[%c0_74, %c0_75], %173 {strides = array<i32>} : memref<16x32xf32, #tpu.memory_space<vmem>>, vector<16x32xf32>,
    return
  }
  func.func @transform_0(%arg0: i32) -> (i32, i32) {
    %c0_i32 = arith.constant 0 : i32
    %c0_i32_0 = arith.constant 0 : i32
    %c0_i32_1 = arith.constant 0 : i32
    return %c0_i32, %c0_i32_0 : i32, i32
  }
  func.func @transform_1(%arg0: i32) -> (i32, i32, i32) {
    %c0_i32 = arith.constant 0 : i32
    %c0_i32_0 = arith.constant 0 : i32
    %c0_i32_1 = arith.constant 0 : i32
    %c0_i32_2 = arith.constant 0 : i32
    return %c0_i32, %c0_i32_0, %c0_i32_1 : i32, i32, i32
  }
  func.func @transform_2(%arg0: i32) -> (i32, i32) {
    %c0_i32 = arith.constant 0 : i32
    %c0_i32_0 = arith.constant 0 : i32
    %c0_i32_1 = arith.constant 0 : i32
    return %c0_i32, %c0_i32_0 : i32, i32
  }
  func.func @transform_3(%arg0: i32) -> (i32, i32) {
    %c0_i32 = arith.constant 0 : i32
    %c0_i32_0 = arith.constant 0 : i32
    %c0_i32_1 = arith.constant 0 : i32
    return %c0_i32, %c0_i32_0 : i32, i32
  }
  func.func @transform_4(%arg0: i32) -> (i32, i32) {
    %c0_i32 = arith.constant 0 : i32
    %c0_i32_0 = arith.constant 0 : i32
    %c0_i32_1 = arith.constant 0 : i32
    return %c0_i32, %c0_i32_0 : i32, i32
  }
  func.func @transform_5(%arg0: i32) -> (i32, i32) {
    %c0_i32 = arith.constant 0 : i32
    %c0_i32_0 = arith.constant 0 : i32
    %c0_i32_1 = arith.constant 0 : i32
    return %c0_i32, %c0_i32_0 : i32, i32
  }
  func.func @transform_6(%arg0: i32) -> (i32, i32) {
    %c0_i32 = arith.constant 0 : i32
    %c0_i32_0 = arith.constant 0 : i32
    %c0_i32_1 = arith.constant 0 : i32
    return %c0_i32, %c0_i32_0 : i32, i32
  }
  func.func @transform_7(%arg0: i32) -> (i32, i32) {
    %c0_i32 = arith.constant 0 : i32
    %c0_i32_0 = arith.constant 0 : i32
    %c0_i32_1 = arith.constant 0 : i32
    return %c0_i32, %c0_i32_0 : i32, i32
  }
  func.func @transform_8(%arg0: i32) -> (i32, i32) {
    %c0_i32 = arith.constant 0 : i32
    %c0_i32_0 = arith.constant 0 : i32
    %c0_i32_1 = arith.constant 0 : i32
    return %c0_i32, %c0_i32_0 : i32, i32
  }
  func.func @transform_9(%arg0: i32) -> (i32, i32) {
    %c0_i32 = arith.constant 0 : i32
    %c0_i32_0 = arith.constant 0 : i32
    %c0_i32_1 = arith.constant 0 : i32
    return %c0_i32, %c0_i32_0 : i32, i32
  }
  func.func @transform_10(%arg0: i32) -> (i32, i32) {
    %c0_i32 = arith.constant 0 : i32
    %c0_i32_0 = arith.constant 0 : i32
    %c0_i32_1 = arith.constant 0 : i32
    return %c0_i32, %c0_i32_0 : i32, i32
  }
  func.func @transform_11(%arg0: i32) -> (i32, i32) {
    %c0_i32 = arith.constant 0 : i32
    %c0_i32_0 = arith.constant 0 : i32
    %c0_i32_1 = arith.constant 0 : i32
    return %c0_i32, %c0_i32_0 : i32, i32
  }
  func.func @transform_12(%arg0: i32) -> (i32, i32) {
    %c0_i32 = arith.constant 0 : i32
    %c0_i32_0 = arith.constant 0 : i32
    %c0_i32_1 = arith.constant 0 : i32
    return %c0_i32, %c0_i32_0 : i32, i32
  }
}

</mosaic_0001>

<bundles_post_ra>
// kernel: tpu_custom_call.1
= control target key start
LH: loop header
LB: loop body
LE: loop exit
PB: predicated region body
PF: predicated region fallthrough
CT: control target
= control target key end

     0   :  { %17 = vsyncpa [#allocation3], 0  ;;  %s2995_s0 = inlined_call_operand.hbm [shape: f32[16,32], index: 0, kind: input, shape index: {}]   ;;  %s2996_s1 = inlined_call_operand.hbm [shape: f32[2,8,8], index: 1, kind: input, shape index: {}]   ;;  %s2997_s2 = inlined_call_operand.vmem [shape: f32[32,96], index: 2, kind: input, shape index: {}]   ;;  %s2998_s3 = inlined_call_operand.vmem [shape: f32[32,32], index: 3, kind: input, shape index: {}]   ;;  %s2999_s4 = inlined_call_operand.vmem [shape: f32[32,64], index: 4, kind: input, shape index: {}]   ;;  %s3000_s5 = inlined_call_operand.vmem [shape: f32[1,64], index: 5, kind: input, shape index: {}]   ;;  %s3001_s6 = inlined_call_operand.vmem [shape: f32[64,32], index: 6, kind: input, shape index: {}]   ;;  %s3002_s7 = inlined_call_operand.vmem [shape: f32[1,32], index: 7, kind: input, shape index: {}]   ;;  %s3003_s8 = inlined_call_operand.vmem [shape: f32[1,32], index: 8, kind: input, shape index: {}]   ;;  %s3004_s9 = inlined_call_operand.vmem [shape: f32[1,32], index: 9, kind: input, shape index: {}]   ;;  %s3005_s10 = inlined_call_operand.vmem [shape: f32[1,32], index: 10, kind: input, shape index: {}]   ;;  %s3006_s11 = inlined_call_operand.vmem [shape: f32[1,32], index: 11, kind: input, shape index: {}]   ;;  %s3007_s12 = inlined_call_operand.hbm [shape: f32[16,32], index: 12, kind: output, shape index: {}]  }
   0x1   :  { %18 = vsyncpa [#allocation6], 0 }
   0x2   :  { %19 = vsyncpa [#allocation4], 0  ;;  %s2603_s21 = smov [#allocation2]   ;;  %s2531_s25 = scalar_lea.hbm %s2995_s0, 256 }
   0x3   :  { %s25_s22 = sshll.u32 %s2603_s21, 4  ;;  %p2532_p0 = scmp.ne.s32.totalorder %s2995_s0, %s2531_s25  ;;  %s26_s22 = int_to_ptr.vmem [resolvable:$true] %s25_s22 }
   0x4   :  { %p2535_p1 = scmp.lt.u32.totalorder %s2531_s25, %s2995_s0 }
   0x6   :  { %p2537_p2 = pnand %p2535_p1, %p2532_p0 }
   0x8   :  { %2540 = shalt.err (!%p2537_p2)
}
   0x9   :  { %s2541_s30 = scalar_lea.vmem %s26_s22, 256  ;;  %p2546_p4 = scmp.lt.s32.totalorder %s26_s22, %s26_s22 }
   0xa   :  { %p2542_p3 = scmp.ne.s32.totalorder %s26_s22, %s2541_s30  ;;  %p2547_p5 = scmp.lt.s32.totalorder %s2541_s30, %s2541_s30 }
   0xc   :  { %p2548_p6 = por %p2547_p5, %p2546_p4 }
   0xe   :  { %p2549_p7 = pnand %p2548_p6, %p2542_p3 }
  0x10   :  { %2552 = shalt.err (!%p2549_p7)
}
  0x11   :  { %s2604_s13 = smov 128   ;;  %s2605_s14 = smov 8  }
  0x12   :  { %31 = dma.hbm_to_vmem [thread:$0]  %s2995_s0, 256, %s26_s22, [#allocation3], %s2604_s13, %s2604_s13, %s2605_s14  }
  0x13   :  { %s2606_s17 = smov [#allocation5]   ;;  %s2553_s21 = scalar_lea.hbm %s2996_s1, 256 }
  0x14   :  { %s37_s18 = sshll.u32 %s2606_s17, 4  ;;  %p2554_p8 = scmp.ne.s32.totalorder %s2996_s1, %s2553_s21  ;;  %s38_s18 = int_to_ptr.vmem [resolvable:$true] %s37_s18 }
  0x15   :  { %p2557_p9 = scmp.lt.u32.totalorder %s2553_s21, %s2996_s1 }
  0x17   :  { %p2559_p10 = pnand %p2557_p9, %p2554_p8 }
  0x19   :  { %2562 = shalt.err (!%p2559_p10)
}
  0x1a   :  { %s2563_s27 = scalar_lea.vmem %s38_s18, 256  ;;  %p2568_p12 = scmp.lt.s32.totalorder %s38_s18, %s38_s18 }
  0x1b   :  { %p2564_p11 = scmp.ne.s32.totalorder %s38_s18, %s2563_s27  ;;  %p2569_p13 = scmp.lt.s32.totalorder %s2563_s27, %s2563_s27 }
  0x1d   :  { %p2570_p0 = por %p2569_p13, %p2568_p12 }
  0x1f   :  { %p2571_p1 = pnand %p2570_p0, %p2564_p11 }
  0x21   :  { %2574 = shalt.err (!%p2571_p1)
}
  0x22   :  { %43 = dma.hbm_to_vmem [thread:$0]  %s2996_s1, 256, %s38_s18, [#allocation6], %s2604_s13, %s2604_s13, %s2605_s14  }
  0x23   :  { %2597 = dma.done.wait [#allocation3], 256  }
  0x24   :  { %2598 = vsyncadd [#allocation3], 4294967040 }
  0x25   :  { %2599 = dma.done.wait [#allocation6], 256  }
  0x26   :  { %2600 = vsyncadd [#allocation6], 4294967040  ;;  %vm80_vm0 = vcmask 261120   ;;  %v2716_v0 = vld [vmem:[#allocation2] sm:$0xff]  ;;  %v2718_v1 = vld [vmem:[#allocation2 + $0x8] sm:$0xff]  ;;  %v2607_v46 = vmov 0.0  }
  0x27   :  { %v81_v2 = vsel %vm80_vm0, %v2716_v0, 0.0  ;;  %v84_v3 = vsel %vm80_vm0, %v2718_v1, 0.0  ;;  %v141_v14 = vld [vmem:[%s2997_s2] sm:$0xff]  ;;  %v142_v15 = vld [vmem:[%s2997_s2 + $0x8] sm:$0xff]  ;;  %v143_v16 = vld [vmem:[%s2997_s2 + $0x10] sm:$0xff]  ;;  %2307 = vmatprep.subr.mxu0 %v2607_v46  ;;  %vm2608_vm5 = vmmov 0  }
  0x28   :  { %82 = vadd.xlane.f32.xlu0 %v81_v2  ;;  %v2427_v17 = vpack.c.bf16 %v142_v15, %v141_v14  ;;  %v144_v18 = vld [vmem:[%s2997_s2 + $0x18] sm:$0xff]  ;;  %v2176_v36 = vld [vmem:[%s3003_s8] ss:$0 sm:$0xff]  ;;  %2309 = vmatprep.mubr.msk.f32.mxu0 %vm2608_vm5, %v2607_v46  ;;  %s2609_s8 = smov 96   ;;  %vm229_vm6 = vcmask 64512   ;;  %s2611_s23 = smov 120  }
  0x29   :  { %v2431_v19 = vpack.c.bf16 %v144_v18, %v143_v16  ;;  %v2177_v39 = vld [vmem:[%s3004_s9] ss:$0 sm:$0xff]  ;;  %v73_v51 = vld [vmem:[#allocation5 + $0x8] sm:$0xff]  ;;  %s2610_s9 = smov 88   ;;  %v72_v60 = vld [vmem:[#allocation5] sm:$0xff]  ;;  %s2612_s24 = smov 80  }
  0x2a   :  { %2428 = vmatprep.subr.bf16.mxu1 %v2427_v17  ;;  %vm75_vm7 = vcmp.eq.f32.partialorder %v73_v51, 0.0  ;;  %vm74_vm8 = vcmp.eq.f32.partialorder %v72_v60, 0.0  ;;  %s2613_s25 = smov 64   ;;  %s2614_s26 = smov 56   ;;  %vm2072_vm13 = vcmask 523264  }
  0x2b   :  { %2430 = vmatpush3.bf16.msra.mxu1 %v2427_v17  ;;  %v2773_v55 = vsel %vm75_vm7, -1e+09, %v2607_v46  ;;  %v2780_v62 = vsel %vm74_vm8, -1e+09, %v2607_v46  ;;  %s2615_s27 = smov 112   ;;  %s2616_s0 = smov 48  }
  0x2c   :  { %85 = vadd.xlane.f32.xlu0 %v84_v3  ;;  %2432 = vmatprep.subr.bf16.mxu1 %v2431_v19  ;;  %s2617_s22 = smov 72   ;;  %s2618_s1 = smov 104  }
  0x2d   :  { %s2619_s18 = smov 40  }
  0x2f   :  { %2434 = vmatpush3.bf16.msra.mxu1 %v2431_v19 }
  0x30   :  { %2297 = vmatprep.subr.mxu1 %v2607_v46 }
  0xb5   :  { %v83_v4 = vpop.xlane.xlu0 %82 }
  0xb6   :  { %v88_v5 = vmul.f32 0.03125, %v83_v4 }
  0xb8   :  { %v90_v6 = vsub.f32 %v2716_v0, %v88_v5 }
  0xb9   :  { %v86_v7 = vpop.xlane.xlu0 %85 }
  0xba   :  { %v89_v8 = vmul.f32 0.03125, %v86_v7  ;;  %v92_v9 = vmul.f32 %v90_v6, %v90_v6  ;;  %v129_v37 = vmul.f32 %v2176_v36, %v90_v6 }
  0xbc   :  { %v91_v10 = vsub.f32 %v2718_v1, %v89_v8  ;;  %v94_v11 = vsel %vm80_vm0, %v92_v9, 0.0 }
  0xbd   :  { %95 = vadd.xlane.f32.xlu1 %v94_v11 }
  0xbe   :  { %v93_v12 = vmul.f32 %v91_v10, %v91_v10  ;;  %v130_v41 = vmul.f32 %v2176_v36, %v91_v10 }
  0xc0   :  { %v97_v13 = vsel %vm80_vm0, %v93_v12, 0.0 }
  0xc1   :  { %98 = vadd.xlane.f32.xlu1 %v97_v13 }
 0x14a   :  { %v96_v20 = vpop.xlane.xlu1 %95 }
 0x14b   :  { %v101_v21 = vmul.f32 0.032258064, %v96_v20 }
 0x14d   :  { %2483 = vrsqrt.f32 %v101_v21  ;;  %vm105_vm1 = vcmp.eq.f32.partialorder %v101_v21, inf  ;;  %v108_v26 = vand.u32 2147483648, %v101_v21  ;;  %vm107_vm2 = vcmp.eq.f32.partialorder %v101_v21, 0.0 }
 0x14e   :  { %v99_v22 = vpop.xlane.xlu1 %98 }
 0x14f   :  { %v102_v23 = vmul.f32 0.032258064, %v99_v22 }
 0x151   :  { %2485 = vrsqrt.f32 %v102_v23  ;;  %vm112_vm3 = vcmp.eq.f32.partialorder %v102_v23, inf  ;;  %v115_v32 = vand.u32 2147483648, %v102_v23  ;;  %vm114_vm4 = vcmp.eq.f32.partialorder %v102_v23, 0.0 }
 0x157   :  { %v2484_v24 = vpop.eup %2483 }
 0x158   :  { %v104_v25 = vmul.f32 %v2484_v24, %v101_v21 }
 0x15a   :  { %v106_v27 = vsel %vm105_vm1, %v101_v21, %v104_v25 }
 0x15b   :  { %v2486_v28 = vpop.eup %2485  ;;  %v109_v29 = vsel %vm107_vm2, %v108_v26, %v106_v27 }
 0x15c   :  { %v111_v30 = vmul.f32 %v2486_v28, %v102_v23  ;;  %v117_v31 = vadd.f32 1e-06, %v109_v29 }
 0x15e   :  { %v113_v33 = vsel %vm112_vm3, %v102_v23, %v111_v30  ;;  %2487 = vrcp.f32 %v117_v31 }
 0x15f   :  { %v116_v34 = vsel %vm114_vm4, %v115_v32, %v113_v33 }
 0x160   :  { %v118_v35 = vadd.f32 1e-06, %v116_v34 }
 0x162   :  { %2489 = vrcp.f32 %v118_v35 }
 0x168   :  { %v2488_v38 = vpop.eup %2487 }
 0x169   :  { %v131_v40 = vmul.f32 %v2488_v38, %v129_v37 }
 0x16b   :  { %v139_v42 = vadd.f32 %v2177_v39, %v131_v40 }
 0x16c   :  { %v2490_v43 = vpop.eup %2489 }
 0x16d   :  { %v132_v44 = vmul.f32 %v2490_v43, %v130_v41  ;;  %2294 = vmatprep.mubr.msk.f32.mxu1 %vm80_vm0, %v139_v42 }
 0x16f   :  { %v140_v45 = vadd.f32 %v2177_v39, %v132_v44 }
 0x171   :  { %2295 = vmatmul.mubr.msk.f32.vlgmr.msra.gmra.mrb[0].mxu1 %vm80_vm0, %v140_v45 }
 0x172   :  { %2299 = vmatprep.mubr.msk.f32.mxu1 %vm2608_vm5, %v2607_v46 }
 0x244   :  { %v2754_v47 = vpop.f32.mrb[0].mxu1 }
 0x245   :  { %305 = vrot.lane.b32.xlu1 %v2754_v47, %s2609_s8  ;;  %v2757_v48 = vpop.f32.mrb[1].mxu1 }
 0x246   :  { %227 = vrot.lane.b32.xlu0 %v2757_v48, %s2609_s8 }
 0x2b7   :  { %v306_v50 = vpop.permute.xlu1 %305 }
 0x2b8   :  { %v228_v49 = vpop.permute.xlu0 %227 }
 0x2b9   :  { %2298 = vmatpush3.xpose.msk.msra.mxu1 %vm229_vm6, %v228_v49 }
 0x2ba   :  { %2302 = vmatprep.subr.mxu1 %v2607_v46 }
 0x2bc   :  { %2300 = vmatmul.mubr.msk.f32.vlgmr.msra.gmra.mrb[2].mxu1 %vm229_vm6, %v2757_v48 }
 0x2bd   :  { %2303 = vmatpush3.xpose.msk.msra.mxu1 %vm229_vm6, %v306_v50  ;;  %2304 = vmatprep.mubr.msk.f32.mxu1 %vm2608_vm5, %v2607_v46 }
 0x2be   :  { %2312 = vmatprep.subr.mxu1 %v2607_v46 }
 0x2c0   :  { %2305 = vmatmul.mubr.msk.f32.vlgmr.msra.gmra.mrb[4].mxu1 %vm229_vm6, %v2754_v47 }
 0x2c1   :  { %2314 = vmatprep.mubr.msk.f32.mxu1 %vm2608_vm5, %v2607_v46 }
 0x38f   :  { %v300_v52 = vpop.f32.mrb[2].mxu1 }
 0x390   :  { %v2301_v53 = vpop.f32.mrb[3].mxu1  ;;  %v381_v61 = vmul.f32 0.35355338, %v300_v52 }
 0x392   :  { %v383_v63 = vadd.f32 %v381_v61, %v2780_v62 }
 0x393   :  { %v377_v54 = vpop.f32.mrb[4].mxu1 }
 0x394   :  { %v382_v56 = vmul.f32 0.35355338, %v377_v54  ;;  %v2306_v57 = vpop.f32.mrb[5].mxu1  ;;  %v385_v2 = vsel %vm229_vm6, %v383_v63, -inf }
 0x396   :  { %v384_v58 = vadd.f32 %v382_v56, %v2773_v55 }
 0x398   :  { %v388_v59 = vsel %vm229_vm6, %v384_v58, -inf }
 0x399   :  { %389 = vmax.xlane.f32.xlu1 %v388_v59 }
 0x3aa   :  { %642 = vrot.lane.b32.xlu1 %v2754_v47, %s2610_s9 }
 0x3ae   :  { %640 = vrot.lane.b32.xlu1 %v2754_v47, %s2611_s23 }
 0x3d2   :  { %386 = vmax.xlane.f32.xlu1 %v385_v2 }
 0x3e3   :  { %564 = vrot.lane.b32.xlu1 %v2757_v48, %s2610_s9 }
 0x3e7   :  { %562 = vrot.lane.b32.xlu1 %v2757_v48, %s2611_s23 }
 0x3eb   :  { %1063 = vrot.lane.b32.xlu1 %v2757_v48, %s2612_s24 }
 0x426   :  { %v390_v3 = vpop.xlane.xlu1 %389 }
 0x427   :  { %v392_v4 = vsub.f32 %v384_v58, %v390_v3 }
 0x429   :  { %v395_v5 = vmul.f32 1.442695, %v392_v4 }
 0x42a   :  { %v643_v8 = vpop.permute.xlu1 %642 }
 0x42b   :  { %2491 = vpow2.f32 %v395_v5 }
 0x42e   :  { %v641_v9 = vpop.permute.xlu1 %640 }
 0x435   :  { %v2492_v6 = vpop.eup %2491 }
 0x436   :  { %v400_v7 = vsel %vm229_vm6, %v2492_v6, 0.0 }
 0x437   :  { %401 = vadd.xlane.f32.xlu0 %v400_v7 }
 0x44d   :  { %485 = vrot.lane.b32.xlu0 %v2754_v47, %s2613_s25 }
 0x45f   :  { %v387_v10 = vpop.xlane.xlu1 %386 }
 0x460   :  { %v391_v11 = vsub.f32 %v383_v63, %v387_v10 }
 0x462   :  { %v393_v12 = vmul.f32 1.442695, %v391_v11 }
 0x463   :  { %v565_v22 = vpop.permute.xlu1 %564 }
 0x464   :  { %2493 = vpow2.f32 %v393_v12 }
 0x467   :  { %v563_v24 = vpop.permute.xlu1 %562 }
 0x46b   :  { %v1064_v45 = vpop.permute.xlu1 %1063 }
 0x46e   :  { %v2494_v13 = vpop.eup %2493 }
 0x46f   :  { %v397_v14 = vsel %vm229_vm6, %v2494_v13, 0.0 }
 0x470   :  { %398 = vadd.xlane.f32.xlu0 %v397_v14 }
 0x486   :  { %409 = vrot.lane.b32.xlu0 %v2757_v48, %s2613_s25 }
 0x4c4   :  { %v402_v15 = vpop.xlane.xlu0 %401 }
 0x4c5   :  { %2495 = vrcp.f32 %v402_v15 }
 0x4c8   :  { %v486_v16 = vpop.permute.xlu0 %485 }
 0x4c9   :  { %2313 = vmatpush3.msra.mxu1 %v486_v16 }
 0x4ca   :  { %2322 = vmatprep.subr.mxu1 %v2607_v46 }
 0x4cf   :  { %v2496_v17 = vpop.eup %2495 }
 0x4d0   :  { %v408_v18 = vmul.f32 %v2496_v17, %v2492_v6  ;;  %v898_v17 = vld [vmem:[%s2998_s3 + $0x8] sm:$0xff] }
 0x4d2   :  { %2315 = vmatmul.mubr.msk.f32.vlgmr.msra.gmra.mrb[6].mxu1 %vm229_vm6, %v408_v18  ;;  %v561_v18 = vld [vmem:[%s2998_s3] sm:$0xff] }
 0x4d3   :  { %2323 = vmatpush3.xpose.msk.msra.mxu1 %vm229_vm6, %v643_v8  ;;  %2324 = vmatprep.mubr.msk.f32.mxu1 %vm2608_vm5, %v2607_v46 }
 0x4d4   :  { %2332 = vmatprep.subr.mxu1 %v2607_v46 }
 0x4d6   :  { %2325 = vmatmul.mubr.msk.f32.vlgmr.msra.gmra.mrb[8].mxu1 %vm229_vm6, %v641_v9 }
 0x4d7   :  { %2334 = vmatprep.mubr.msk.f32.mxu1 %vm2608_vm5, %v2607_v46 }
 0x4fd   :  { %v399_v19 = vpop.xlane.xlu0 %398 }
 0x4fe   :  { %2497 = vrcp.f32 %v399_v19 }
 0x501   :  { %v410_v20 = vpop.permute.xlu0 %409 }
 0x502   :  { %2308 = vmatpush3.msra.mxu0 %v410_v20 }
 0x503   :  { %2317 = vmatprep.subr.mxu0 %v2607_v46 }
 0x508   :  { %v2498_v21 = vpop.eup %2497 }
 0x509   :  { %v407_v23 = vmul.f32 %v2498_v21, %v2494_v13 }
 0x50b   :  { %2310 = vmatmul.mubr.msk.f32.vlgmr.msra.gmra.mrb[0].mxu0 %vm229_vm6, %v407_v23 }
 0x50c   :  { %2318 = vmatpush3.xpose.msk.msra.mxu0 %vm229_vm6, %v565_v22  ;;  %2319 = vmatprep.mubr.msk.f32.mxu0 %vm2608_vm5, %v2607_v46 }
 0x50d   :  { %2327 = vmatprep.subr.mxu0 %v2607_v46 }
 0x50f   :  { %2320 = vmatmul.mubr.msk.f32.vlgmr.msra.gmra.mrb[2].mxu0 %vm229_vm6, %v563_v24 }
 0x510   :  { %2329 = vmatprep.mubr.msk.f32.mxu0 %vm2608_vm5, %v2607_v46 }
 0x5a5   :  { %v2810_v25 = vpop.f32.mrb[6].mxu1 }
 0x5a6   :  { %v2316_v26 = vpop.f32.mrb[7].mxu1 }
 0x5a9   :  { %v714_v27 = vpop.f32.mrb[8].mxu1 }
 0x5aa   :  { %v719_v28 = vmul.f32 0.35355338, %v714_v27  ;;  %v2326_v29 = vpop.f32.mrb[9].mxu1 }
 0x5ac   :  { %v721_v30 = vadd.f32 %v719_v28, %v2773_v55 }
 0x5ae   :  { %v725_v31 = vsel %vm229_vm6, %v721_v30, -inf }
 0x5af   :  { %726 = vmax.xlane.f32.xlu0 %v725_v31 }
 0x5c5   :  { %822 = vrot.lane.b32.xlu0 %v2754_v47, %s2614_s26 }
 0x5c9   :  { %1061 = vrot.lane.b32.xlu0 %v2757_v48, %s2615_s27 }
 0x5cd   :  { %1139 = vrot.lane.b32.xlu0 %v2754_v47, %s2615_s27 }
 0x5de   :  { %v2818_v32 = vpop.f32.mrb[0].mxu0 }
 0x5df   :  { %v2311_v33 = vpop.f32.mrb[1].mxu0 }
 0x5e2   :  { %v636_v34 = vpop.f32.mrb[2].mxu0 }
 0x5e3   :  { %v2321_v35 = vpop.f32.mrb[3].mxu0  ;;  %v718_v42 = vmul.f32 0.35355338, %v636_v34 }
 0x5e4   :  { %v1397_v35 = vld [vmem:[%s2998_s3 + $0x10] sm:$0xff] }
 0x5e5   :  { %v720_v43 = vadd.f32 %v718_v42, %v2780_v62 }
 0x5e7   :  { %v722_v44 = vsel %vm229_vm6, %v720_v43, -inf }
 0x63c   :  { %v727_v36 = vpop.xlane.xlu0 %726 }
 0x63d   :  { %v729_v37 = vsub.f32 %v721_v30, %v727_v36 }
 0x63f   :  { %v732_v38 = vmul.f32 1.442695, %v729_v37 }
 0x640   :  { %v823_v39 = vpop.permute.xlu0 %822 }
 0x641   :  { %2499 = vpow2.f32 %v732_v38  ;;  %2333 = vmatpush3.msra.mxu1 %v823_v39 }
 0x642   :  { %2347 = vmatprep.subr.mxu1 %v2607_v46 }
 0x644   :  { %v1062_v52 = vpop.permute.xlu0 %1061 }
 0x648   :  { %v1140_v54 = vpop.permute.xlu0 %1139 }
 0x64b   :  { %v2500_v40 = vpop.eup %2499 }
 0x64c   :  { %v737_v41 = vsel %vm229_vm6, %v2500_v40, 0.0 }
 0x64d   :  { %738 = vadd.xlane.f32.xlu1 %v737_v41 }
 0x65e   :  { %1141 = vrot.lane.b32.xlu1 %v2754_v47, %s2612_s24 }
 0x682   :  { %723 = vmax.xlane.f32.xlu1 %v722_v44 }
 0x6da   :  { %v739_v49 = vpop.xlane.xlu1 %738 }
 0x6db   :  { %2501 = vrcp.f32 %v739_v49 }
 0x6de   :  { %v1142_v53 = vpop.permute.xlu1 %1141 }
 0x6e5   :  { %v2502_v50 = vpop.eup %2501 }
 0x6e6   :  { %v745_v51 = vmul.f32 %v2502_v50, %v2500_v40 }
 0x6e8   :  { %2335 = vmatmul.mubr.msk.f32.vlgmr.msra.gmra.mrb[10].mxu1 %vm229_vm6, %v745_v51 }
 0x6e9   :  { %2348 = vmatpush3.xpose.msk.msra.mxu1 %vm229_vm6, %v1064_v45  ;;  %2349 = vmatprep.mubr.msk.f32.mxu1 %vm2608_vm5, %v2607_v46 }
 0x6ea   :  { %2352 = vmatprep.subr.mxu1 %v2607_v46 }
 0x6ec   :  { %2350 = vmatmul.mubr.msk.f32.vlgmr.msra.gmra.mrb[12].mxu1 %vm229_vm6, %v1062_v52 }
 0x6ed   :  { %2353 = vmatpush3.xpose.msk.msra.mxu1 %vm229_vm6, %v1142_v53  ;;  %2354 = vmatprep.mubr.msk.f32.mxu1 %vm2608_vm5, %v2607_v46 }
 0x6ee   :  { %2362 = vmatprep.subr.mxu1 %v2607_v46 }
 0x6f0   :  { %2355 = vmatmul.mubr.msk.f32.vlgmr.msra.gmra.mrb[14].mxu1 %vm229_vm6, %v1140_v54 }
 0x6f1   :  { %2364 = vmatprep.mubr.msk.f32.mxu1 %vm2608_vm5, %v2607_v46 }
 0x70f   :  { %v724_v56 = vpop.xlane.xlu1 %723 }
 0x710   :  { %v728_v57 = vsub.f32 %v720_v43, %v724_v56 }
 0x712   :  { %v730_v58 = vmul.f32 1.442695, %v728_v57 }
 0x714   :  { %2503 = vpow2.f32 %v730_v58 }
 0x71e   :  { %v2504_v59 = vpop.eup %2503 }
 0x71f   :  { %v734_v60 = vsel %vm229_vm6, %v2504_v59, 0.0 }
 0x720   :  { %735 = vadd.xlane.f32.xlu0 %v734_v60 }
 0x736   :  { %746 = vrot.lane.b32.xlu0 %v2757_v48, %s2614_s26 }
 0x73a   :  { %1321 = vrot.lane.b32.xlu0 %v2754_v47, %s2616_s0 }
 0x73e   :  { %1483 = vrot.lane.b32.xlu0 %v2757_v48, %s2617_s22 }
 0x742   :  { %1561 = vrot.lane.b32.xlu0 %v2754_v47, %s2617_s22 }
 0x746   :  { %1481 = vrot.lane.b32.xlu0 %v2757_v48, %s2618_s1 }
 0x7ad   :  { %v736_v61 = vpop.xlane.xlu0 %735 }
 0x7ae   :  { %2505 = vrcp.f32 %v736_v61 }
 0x7b1   :  { %v747_v63 = vpop.permute.xlu0 %746 }
 0x7b2   :  { %2328 = vmatpush3.msra.mxu0 %v747_v63 }
 0x7b3   :  { %2337 = vmatprep.subr.mxu0 %v898_v17 }
 0x7b5   :  { %v1322_v2 = vpop.permute.xlu0 %1321 }
 0x7b6   :  { %2363 = vmatpush3.msra.mxu1 %v1322_v2 }
 0x7b7   :  { %2372 = vmatprep.subr.mxu1 %v2607_v46 }
 0x7b8   :  { %v2506_v3 = vpop.eup %2505 }
 0x7b9   :  { %v744_v4 = vmul.f32 %v2506_v3, %v2504_v59  ;;  %v1484_v37 = vpop.permute.xlu0 %1483 }
 0x7bb   :  { %2330 = vmatmul.mubr.msk.f32.vlgmr.msra.gmra.mrb[4].mxu0 %vm229_vm6, %v744_v4  ;;  %v894_v5 = vpop.f32.mrb[10].mxu1 }
 0x7bc   :  { %v2336_v6 = vpop.f32.mrb[11].mxu1  ;;  %2338 = vmatpush3.msra.mxu0 %v898_v17 }
 0x7bd   :  { %2342 = vmatprep.subr.mxu0 %v561_v18  ;;  %v1562_v39 = vpop.permute.xlu0 %1561 }
 0x7bf   :  { %v1135_v7 = vpop.f32.mrb[12].mxu1 }
 0x7c0   :  { %v1217_v8 = vmul.f32 0.35355338, %v1135_v7  ;;  %v2351_v9 = vpop.f32.mrb[13].mxu1 }
 0x7c1   :  { %v1482_v41 = vpop.permute.xlu0 %1481 }
 0x7c2   :  { %v1219_v10 = vadd.f32 %v1217_v8, %v2780_v62 }
 0x7c3   :  { %v1213_v11 = vpop.f32.mrb[14].mxu1 }
 0x7c4   :  { %v1218_v12 = vmul.f32 0.35355338, %v1213_v11  ;;  %v2356_v13 = vpop.f32.mrb[15].mxu1  ;;  %v1221_v14 = vsel %vm229_vm6, %v1219_v10, -inf }
 0x7c5   :  { %1222 = vmax.xlane.f32.xlu1 %v1221_v14  ;;  %v1817_v14 = vld [vmem:[%s2998_s3 + $0x18] sm:$0xff] }
 0x7c6   :  { %v1220_v15 = vadd.f32 %v1218_v12, %v2773_v55 }
 0x7c8   :  { %v1224_v16 = vsel %vm229_vm6, %v1220_v15, -inf }
 0x7c9   :  { %1225 = vmax.xlane.f32.xlu1 %v1224_v16 }
 0x852   :  { %v1223_v19 = vpop.xlane.xlu1 %1222 }
 0x853   :  { %v1227_v20 = vsub.f32 %v1219_v10, %v1223_v19 }
 0x855   :  { %v1229_v21 = vmul.f32 1.442695, %v1227_v20 }
 0x856   :  { %v1226_v22 = vpop.xlane.xlu1 %1225 }
 0x857   :  { %2507 = vpow2.f32 %v1229_v21  ;;  %v1228_v23 = vsub.f32 %v1220_v15, %v1226_v22 }
 0x859   :  { %v1231_v24 = vmul.f32 1.442695, %v1228_v23 }
 0x85b   :  { %2509 = vpow2.f32 %v1231_v24 }
 0x861   :  { %v2508_v26 = vpop.eup %2507 }
 0x862   :  { %v1233_v27 = vsel %vm229_vm6, %v2508_v26, 0.0 }
 0x863   :  { %1234 = vadd.xlane.f32.xlu1 %v1233_v27 }
 0x865   :  { %v2510_v28 = vpop.eup %2509 }
 0x866   :  { %v1236_v29 = vsel %vm229_vm6, %v2510_v28, 0.0 }
 0x867   :  { %1237 = vadd.xlane.f32.xlu1 %v1236_v29 }
 0x878   :  { %1245 = vrot.lane.b32.xlu1 %v2757_v48, %s2616_s0 }
 0x87c   :  { %1559 = vrot.lane.b32.xlu1 %v2754_v47, %s2618_s1 }
 0x88e   :  { %v818_v30 = vpop.f32.mrb[4].mxu0 }
 0x88f   :  { %v2331_v31 = vpop.f32.mrb[5].mxu0  ;;  %2339 = vmatprep.mubr.msk.f32.mxu0 %vm229_vm6, %v818_v30 }
 0x890   :  { %2340 = vmatmul.mubr.msk.f32.vlgmr.msra.gmra.mrb[6].mxu0 %vm229_vm6, %v894_v5 }
 0x891   :  { %2344 = vmatprep.mubr.msk.f32.mxu0 %vm229_vm6, %v2818_v32  ;;  %2343 = vmatpush3.msra.mxu0 %v561_v18 }
 0x892   :  { %2357 = vmatprep.subr.mxu0 %v2607_v46 }
 0x898   :  { %2345 = vmatmul.mubr.msk.f32.vlgmr.msra.gmra.mrb[6].mxu0 %vm229_vm6, %v2810_v25 }
 0x899   :  { %2359 = vmatprep.mubr.msk.f32.mxu0 %vm2608_vm5, %v2607_v46 }
 0x8f0   :  { %v1235_v33 = vpop.xlane.xlu1 %1234 }
 0x8f1   :  { %2511 = vrcp.f32 %v1235_v33 }
 0x8f4   :  { %v1238_v34 = vpop.xlane.xlu1 %1237 }
 0x8f5   :  { %2513 = vrcp.f32 %v1238_v34  ;;  %v1963_v34 = vld [vmem:[%s2999_s4] sm:$0xff] }
 0x8f8   :  { %v1246_v36 = vpop.permute.xlu1 %1245 }
 0x8f9   :  { %2358 = vmatpush3.msra.mxu0 %v1246_v36  ;;  %v1965_v36 = vld [vmem:[%s2999_s4 + $0x10] sm:$0xff] }
 0x8fa   :  { %2367 = vmatprep.subr.mxu0 %v1397_v35 }
 0x8fb   :  { %v2512_v32 = vpop.eup %2511 }
 0x8fc   :  { %v1243_v38 = vmul.f32 %v2512_v32, %v2508_v26  ;;  %v1560_v49 = vpop.permute.xlu1 %1559  ;;  %v1966_v32 = vld [vmem:[%s2999_s4 + $0x18] sm:$0xff] }
 0x8fe   :  { %2360 = vmatmul.mubr.msk.f32.vlgmr.msra.gmra.mrb[8].mxu0 %vm229_vm6, %v1243_v38  ;;  %v2439_v38 = vpack.c.bf16 %v1966_v32, %v1965_v36 }
 0x8ff   :  { %v2514_v25 = vpop.eup %2513  ;;  %2368 = vmatpush3.msra.mxu0 %v1397_v35  ;;  %v1964_v35 = vld [vmem:[%s2999_s4 + $0x8] sm:$0xff] }
 0x900   :  { %v1244_v40 = vmul.f32 %v2514_v25, %v2510_v28  ;;  %2377 = vmatprep.subr.mxu0 %v2607_v46  ;;  %v2057_v25 = vld [vmem:[%s3001_s6] sm:$0xff] }
 0x902   :  { %2365 = vmatmul.mubr.msk.f32.vlgmr.msra.gmra.mrb[16].mxu1 %vm229_vm6, %v1244_v40  ;;  %v2059_v40 = vld [vmem:[%s3001_s6 + $0x10] sm:$0xff] }
 0x903   :  { %2373 = vmatpush3.xpose.msk.msra.mxu1 %vm229_vm6, %v1484_v37  ;;  %2374 = vmatprep.mubr.msk.f32.mxu1 %vm2608_vm5, %v2607_v46  ;;  %v2435_v37 = vpack.c.bf16 %v1964_v35, %v1963_v34 }
 0x904   :  { %2382 = vmatprep.subr.mxu1 %v2607_v46 }
 0x906   :  { %2375 = vmatmul.mubr.msk.f32.vlgmr.msra.gmra.mrb[18].mxu1 %vm229_vm6, %v1482_v41 }
 0x907   :  { %2384 = vmatprep.mubr.msk.f32.mxu1 %vm2608_vm5, %v2607_v46 }
 0x9d1   :  { %v1317_v42 = vpop.f32.mrb[8].mxu0 }
 0x9d2   :  { %v2361_v43 = vpop.f32.mrb[9].mxu0  ;;  %2369 = vmatprep.mubr.msk.f32.mxu0 %vm229_vm6, %v1317_v42  ;;  %v2060_v42 = vld [vmem:[%s3001_s6 + $0x18] sm:$0xff] }
 0x9d3   :  { %v2447_v43 = vpack.c.bf16 %v2060_v42, %v2059_v40 }
 0x9d5   :  { %v1393_v44 = vpop.f32.mrb[16].mxu1 }
 0x9d6   :  { %v2366_v45 = vpop.f32.mrb[17].mxu1  ;;  %2370 = vmatmul.mubr.msk.f32.vlgmr.msra.gmra.mrb[6].mxu0 %vm229_vm6, %v1393_v44  ;;  %v2061_v44 = vld [vmem:[%s3001_s6 + $0x20] sm:$0xff] }
 0x9d7   :  { %2378 = vmatpush3.xpose.msk.msra.mxu0 %vm229_vm6, %v1562_v39  ;;  %2379 = vmatprep.mubr.msk.f32.mxu0 %vm2608_vm5, %v2607_v46  ;;  %v2058_v39 = vld [vmem:[%s3001_s6 + $0x8] sm:$0xff] }
 0x9d8   :  { %2387 = vmatprep.subr.mxu0 %v2607_v46  ;;  %v2443_v41 = vpack.c.bf16 %v2058_v39, %v2057_v25  ;;  %v2062_v45 = vld [vmem:[%s3001_s6 + $0x28] sm:$0xff] }
 0x9d9   :  { %v1555_v50 = vpop.f32.mrb[18].mxu1 }
 0x9da   :  { %v1637_v51 = vmul.f32 0.35355338, %v1555_v50  ;;  %v2376_v52 = vpop.f32.mrb[19].mxu1  ;;  %2380 = vmatmul.mubr.msk.f32.vlgmr.msra.gmra.mrb[10].mxu0 %vm229_vm6, %v1560_v49  ;;  %v2451_v49 = vpack.c.bf16 %v2062_v45, %v2061_v44 }
 0x9db   :  { %2389 = vmatprep.mubr.msk.f32.mxu0 %vm2608_vm5, %v2607_v46 }
 0x9dc   :  { %v1639_v53 = vadd.f32 %v1637_v51, %v2780_v62 }
 0x9de   :  { %v1641_v54 = vsel %vm229_vm6, %v1639_v53, -inf }
 0x9df   :  { %1642 = vmax.xlane.f32.xlu0 %v1641_v54 }
 0xa6c   :  { %v1643_v56 = vpop.xlane.xlu0 %1642 }
 0xa6d   :  { %v1647_v57 = vsub.f32 %v1639_v53, %v1643_v56 }
 0xa6f   :  { %v1649_v58 = vmul.f32 1.442695, %v1647_v57 }
 0xa71   :  { %2515 = vpow2.f32 %v1649_v58 }
 0xa7b   :  { %v2516_v59 = vpop.eup %2515 }
 0xa7c   :  { %v1653_v60 = vsel %vm229_vm6, %v2516_v59, 0.0 }
 0xa7d   :  { %1654 = vadd.xlane.f32.xlu0 %v1653_v60 }
 0xaad   :  { %v1633_v61 = vpop.f32.mrb[10].mxu0 }
 0xaae   :  { %v1638_v63 = vmul.f32 0.35355338, %v1633_v61  ;;  %v2381_v2 = vpop.f32.mrb[11].mxu0 }
 0xab0   :  { %v1640_v3 = vadd.f32 %v1638_v63, %v2773_v55 }
 0xab2   :  { %v1644_v46 = vsel %vm229_vm6, %v1640_v3, -inf }
 0xab3   :  { %1645 = vmax.xlane.f32.xlu1 %v1644_v46 }
 0xac4   :  { %1741 = vrot.lane.b32.xlu1 %v2754_v47, %s2619_s18 }
 0xb0a   :  { %v1655_v9 = vpop.xlane.xlu0 %1654 }
 0xb40   :  { %v1646_v62 = vpop.xlane.xlu1 %1645 }
 0xb41   :  { %v1648_v4 = vsub.f32 %v1640_v3, %v1646_v62 }
 0xb43   :  { %v1651_v5 = vmul.f32 1.442695, %v1648_v4  ;;  %v2212_v4 = vld [vmem:[%s3005_s10] ss:$0 sm:$0xff] }
 0xb44   :  { %v1742_v6 = vpop.permute.xlu1 %1741 }
 0xb45   :  { %2517 = vpow2.f32 %v1651_v5  ;;  %2388 = vmatpush3.msra.mxu0 %v1742_v6 }
 0xb46   :  { %2519 = vrcp.f32 %v1655_v9  ;;  %2392 = vmatprep.subr.mxu0 %v1817_v14  ;;  %v2213_v9 = vld [vmem:[%s3006_s11] ss:$0 sm:$0xff] }
 0xb4f   :  { %v2518_v7 = vpop.eup %2517 }
 0xb50   :  { %v1656_v8 = vsel %vm229_vm6, %v2518_v7, 0.0  ;;  %v2520_v10 = vpop.eup %2519 }
 0xb51   :  { %1657 = vadd.xlane.f32.xlu0 %v1656_v8  ;;  %v1663_v11 = vmul.f32 %v2520_v10, %v2516_v59 }
 0xb67   :  { %1665 = vrot.lane.b32.xlu0 %v2757_v48, %s2619_s18 }
 0xbde   :  { %v1658_v55 = vpop.xlane.xlu0 %1657 }
 0xbdf   :  { %2521 = vrcp.f32 %v1658_v55 }
 0xbe2   :  { %v1666_v12 = vpop.permute.xlu0 %1665 }
 0xbe3   :  { %2383 = vmatpush3.msra.mxu1 %v1666_v12 }
 0xbe4   :  { %2385 = vmatmul.mubr.msk.f32.vlgmr.msra.gmra.mrb[20].mxu1 %vm229_vm6, %v1663_v11  ;;  %2436 = vmatprep.subr.bf16.mxu1 %v2435_v37 }
 0xbe5   :  { %2438 = vmatpush3.bf16.msra.mxu1 %v2435_v37 }
 0xbe6   :  { %2440 = vmatprep.subr.bf16.mxu1 %v2439_v38 }
 0xbe9   :  { %v2522_v47 = vpop.eup %2521  ;;  %2442 = vmatpush3.bf16.msra.mxu1 %v2439_v38 }
 0xbea   :  { %v1664_v13 = vmul.f32 %v2522_v47, %v2518_v7  ;;  %v2063_v47 = vld [vmem:[%s3001_s6 + $0x30] sm:$0xff] }
 0xbec   :  { %2390 = vmatmul.mubr.msk.f32.vlgmr.msra.gmra.mrb[12].mxu0 %vm229_vm6, %v1664_v13  ;;  %v2064_v13 = vld [vmem:[%s3001_s6 + $0x38] sm:$0xff]  ;;  %s2620_s6 = smov [#allocation7]  }
 0xbed   :  { %2393 = vmatpush3.msra.mxu0 %v1817_v14  ;;  %v2455_v14 = vpack.c.bf16 %v2064_v13, %v2063_v47  ;;  %s2163_s25 = sshll.u32 %s2620_s6, 4  ;;  %s2164_s25 = int_to_ptr.vmem [resolvable:$true] %s2163_s25 }
 0xbee   :  { %2444 = vmatprep.subr.bf16.mxu0 %v2443_v41  ;;  %p2580_p3 = scmp.lt.s32.totalorder %s2164_s25, %s2164_s25 }
 0xcb7   :  { %v1737_v48 = vpop.f32.mrb[20].mxu1 }
 0xcb8   :  { %v2386_v15 = vpop.f32.mrb[21].mxu1  ;;  %2394 = vmatprep.mubr.msk.f32.mxu0 %vm229_vm6, %v1737_v48  ;;  %v2214_v48 = vld [vmem:[%s3000_s5] ss:$0 sm:$0xff]  ;;  %s2575_s5 = scalar_lea.vmem %s2164_s25, 256 }
 0xcb9   :  { %p2576_p2 = scmp.ne.s32.totalorder %s2164_s25, %s2575_s5  ;;  %p2581_p4 = scmp.lt.s32.totalorder %s2575_s5, %s2575_s5 }
 0xcbb   :  { %p2582_p5 = por %p2581_p4, %p2580_p3 }
 0xcbd   :  { %p2583_p6 = pnand %p2582_p5, %p2576_p2 }
 0xcbf   :  { %v1813_v16 = vpop.f32.mrb[12].mxu0 }
 0xcc0   :  { %v2391_v17 = vpop.f32.mrb[13].mxu0  ;;  %2395 = vmatmul.mubr.msk.f32.vlgmr.msra.gmra.mrb[6].mxu0 %vm229_vm6, %v1813_v16 }
 0xcc1   :  { %2446 = vmatpush3.bf16.msra.mxu0 %v2443_v41 }
 0xcc2   :  { %2448 = vmatprep.subr.bf16.mxu0 %v2447_v43 }
 0xcc5   :  { %2450 = vmatpush3.bf16.msra.mxu0 %v2447_v43 }
 0xcc6   :  { %2452 = vmatprep.subr.bf16.mxu0 %v2451_v49 }
 0xcc9   :  { %2454 = vmatpush3.bf16.msra.mxu0 %v2451_v49 }
 0xcca   :  { %2456 = vmatprep.subr.bf16.mxu0 %v2455_v14 }
 0xccd   :  { %2458 = vmatpush3.bf16.msra.mxu0 %v2455_v14 }
 0xd93   :  { %v2396_v18 = vpop.f32.mrb[6].mxu0 }
 0xd94   :  { %v2913_v19 = vadd.f32 %v2396_v18, %v2718_v1  ;;  %v1890_v20 = vpop.f32.mrb[7].mxu0 }
 0xd95   :  { %v2916_v21 = vadd.f32 %v1890_v20, %v2716_v0 }
 0xd96   :  { %v1908_v22 = vsel %vm80_vm0, %v2913_v19, 0.0 }
 0xd97   :  { %1909 = vadd.xlane.f32.xlu0 %v1908_v22  ;;  %v1905_v23 = vsel %vm80_vm0, %v2916_v21, 0.0 }
 0xd98   :  { %1906 = vadd.xlane.f32.xlu1 %v1905_v23  ;;  %v2217_v23 = vld [vmem:[%s3002_s7] ss:$0 sm:$0xff] }
 0xe24   :  { %v1910_v24 = vpop.xlane.xlu0 %1909 }
 0xe25   :  { %v1912_v26 = vmul.f32 0.03125, %v1910_v24  ;;  %v1907_v27 = vpop.xlane.xlu1 %1906 }
 0xe26   :  { %v1911_v28 = vmul.f32 0.03125, %v1907_v27 }
 0xe27   :  { %v1914_v29 = vsub.f32 %v2913_v19, %v1912_v26 }
 0xe28   :  { %v1913_v1 = vsub.f32 %v2916_v21, %v1911_v28 }
 0xe29   :  { %v1916_v30 = vmul.f32 %v1914_v29, %v1914_v29  ;;  %v1952_v5 = vmul.f32 %v2212_v4, %v1914_v29 }
 0xe2a   :  { %v1915_v31 = vmul.f32 %v1913_v1, %v1913_v1  ;;  %v1951_v7 = vmul.f32 %v2212_v4, %v1913_v1 }
 0xe2b   :  { %v1920_v0 = vsel %vm80_vm0, %v1916_v30, 0.0 }
 0xe2c   :  { %1921 = vadd.xlane.f32.xlu1 %v1920_v0  ;;  %v1917_v33 = vsel %vm80_vm0, %v1915_v31, 0.0 }
 0xe2d   :  { %1918 = vadd.xlane.f32.xlu0 %v1917_v33 }
 0xeb9   :  { %v1922_v50 = vpop.xlane.xlu1 %1921 }
 0xeba   :  { %v1924_v51 = vmul.f32 0.032258064, %v1922_v50  ;;  %v1919_v52 = vpop.xlane.xlu0 %1918 }
 0xebb   :  { %v1923_v53 = vmul.f32 0.032258064, %v1919_v52 }
 0xebc   :  { %2523 = vrsqrt.f32 %v1924_v51  ;;  %vm1934_vm9 = vcmp.eq.f32.partialorder %v1924_v51, inf  ;;  %v1937_v58 = vand.u32 2147483648, %v1924_v51  ;;  %vm1936_vm10 = vcmp.eq.f32.partialorder %v1924_v51, 0.0 }
 0xebd   :  { %2525 = vrsqrt.f32 %v1923_v53  ;;  %vm1927_vm11 = vcmp.eq.f32.partialorder %v1923_v53, inf  ;;  %v1930_v61 = vand.u32 2147483648, %v1923_v53  ;;  %vm1929_vm12 = vcmp.eq.f32.partialorder %v1923_v53, 0.0 }
 0xec6   :  { %v2524_v54 = vpop.eup %2523 }
 0xec7   :  { %v2526_v56 = vpop.eup %2525  ;;  %v1933_v57 = vmul.f32 %v2524_v54, %v1924_v51 }
 0xec8   :  { %v1926_v59 = vmul.f32 %v2526_v56, %v1923_v53 }
 0xec9   :  { %v1935_v60 = vsel %vm1934_vm9, %v1924_v51, %v1933_v57 }
 0xeca   :  { %v1938_v63 = vsel %vm1936_vm10, %v1937_v58, %v1935_v60  ;;  %v1928_v2 = vsel %vm1927_vm11, %v1923_v53, %v1926_v59 }
 0xecb   :  { %v1940_v3 = vadd.f32 1e-06, %v1938_v63  ;;  %v1931_v46 = vsel %vm1929_vm12, %v1930_v61, %v1928_v2 }
 0xecc   :  { %v1939_v62 = vadd.f32 1e-06, %v1931_v46 }
 0xecd   :  { %2527 = vrcp.f32 %v1940_v3 }
 0xece   :  { %2529 = vrcp.f32 %v1939_v62 }
 0xed7   :  { %v2528_v6 = vpop.eup %2527 }
 0xed8   :  { %v2530_v8 = vpop.eup %2529  ;;  %v1954_v55 = vmul.f32 %v2528_v6, %v1952_v5 }
 0xed9   :  { %v1953_v10 = vmul.f32 %v2530_v8, %v1951_v7 }
 0xeda   :  { %v1962_v12 = vadd.f32 %v2213_v9, %v1954_v55 }
 0xedb   :  { %v1961_v11 = vadd.f32 %v2213_v9, %v1953_v10 }
 0xedd   :  { %2405 = vmatprep.mubr.msk.f32.mxu1 %vm80_vm0, %v1961_v11 }
 0xede   :  { %2406 = vmatmul.mubr.msk.f32.vlgmr.msra.gmra.mrb[22].mxu1 %vm80_vm0, %v1962_v12 }
 0xfb1   :  { %v2407_v15 = vpop.f32.mrb[22].mxu1 }
 0xfb2   :  { %v2052_v16 = vadd.f32 %v2407_v15, %v2214_v48  ;;  %v2046_v17 = vpop.f32.mrb[23].mxu1 }
 0xfb3   :  { %v2047_v18 = vadd.f32 %v2214_v48, %v2046_v17 }
 0xfb4   :  { %v2056_v22 = vmax.f32 %v2052_v16, 0.0 }
 0xfb5   :  { %v2055_v20 = vmax.f32 %v2047_v18, 0.0 }
 0xfb7   :  { %2424 = vmatprep.mubr.msk.f32.mxu0 %vm2072_vm13, %v2055_v20 }
 0xfb8   :  { %2425 = vmatmul.mubr.msk.f32.vlgmr.msra.gmra.mrb[14].mxu0 %vm2072_vm13, %v2056_v22 }
0x108b   :  { %v2426_v24 = vpop.f32.mrb[14].mxu0 }
0x108c   :  { %v2151_v26 = vadd.f32 %v2426_v24, %v2217_v23  ;;  %v2145_v27 = vpop.f32.mrb[15].mxu0 }
0x108d   :  { %v2146_v28 = vadd.f32 %v2217_v23, %v2145_v27 }
0x108e   :  { %v2155_v29 = vadd.f32 %v2151_v26, %v2913_v19 }
0x108f   :  { %v2154_v1 = vadd.f32 %v2146_v28, %v2916_v21 }
0x1090   :  { %2157 = vst.msk [vmem:[#allocation7 + $0x8] sm:$0xff] %vm80_vm0, %v2155_v29 }
0x1091   :  { %2156 = vst.msk [vmem:[#allocation7] sm:$0xff] %vm80_vm0, %v2154_v1 }
0x1092   :  { %2586 = shalt.err (!%p2583_p6)
}
0x1093   :  { %s2587_s27 = scalar_lea.hbm %s3007_s12, 256 }
0x1094   :  { %p2588_p7 = scmp.ne.s32.totalorder %s3007_s12, %s2587_s27  ;;  %p2591_p8 = scmp.lt.u32.totalorder %s2587_s27, %s3007_s12 }
0x1096   :  { %p2593_p9 = pnand %p2591_p8, %p2588_p7 }
0x1098   :  { %2596 = shalt.err (!%p2593_p9)
}
0x1099   :  { %2169 = dma.vmem_to_hbm [thread:$0]  %s2164_s25, 256, %s3007_s12, [#allocation4], %s2604_s13, %s2604_s13, %s2605_s14  }
0x109a   :  { %2601 = dma.done.wait [#allocation4], 256  }
0x109b   :  { %2602 = vsyncadd [#allocation4], 4294967040 }
0x109c   :  { %2173 = vsyncpa [#allocation3], 1 }
0x109d   :  { %2174 = vsyncpa [#allocation6], 1 }
0x109e   :  { %2175 = vsyncpa [#allocation4], 1 }

</bundles_post_ra>
